<compile_context>
chip_gen: v6e
topology: v6e:2x2x1
jax: 0.10.0
libtpu: 0.0.40
codegen_flags: <defaults>
</compile_context>

<pallas_src>
import functools

import jax
import jax.numpy as jnp
from jax.experimental import pallas as pl
from jax.experimental.pallas import tpu as pltpu

LANES = 128
_TARGET_BLOCK_BYTES = 4 * 1024 * 1024   # ~4 MiB per input per pipeline buffer
_SMALL_INPUT_ELEMS = 1 << 21            # below this, plain XLA wins


def _num_tensorcores():
    """Best-effort TensorCores-per-device detection (v7x exposes 2)."""
    try:
        kind = jax.devices()[0].device_kind.lower()
    except Exception:
        return 1
    if "v7" in kind:
        return 2
    return 1


def _mae_partial_kernel(y_ref, z_ref, out_ref, *, total_rows, tile_rows,
                        tiles_per_split, need_mask):
    """Accumulate sum(|y - z|) into a lane-dense (1, 1, 128) f32 output block."""
    j = pl.program_id(1)

    @pl.when(j == 0)
    def _():
        out_ref[...] = jnp.zeros_like(out_ref)

    diff = y_ref[...].astype(jnp.float32) - z_ref[...].astype(jnp.float32)
    abs_diff = jnp.abs(diff)

    if need_mask:
        # Mask rows past the true end of the data.  The iota is loop-invariant;
        # only the scalar `rows_remaining` changes per step.  Fully out-of-range
        # (duplicated, index-clamped) tiles get rows_remaining <= 0 -> contribute 0.
        c = pl.program_id(0)
        global_tile = c * tiles_per_split + j
        rows_remaining = total_rows - global_tile * tile_rows
        row_in_tile = jax.lax.broadcasted_iota(jnp.int32, abs_diff.shape, 0)
        abs_diff = jnp.where(row_in_tile < rows_remaining, abs_diff, 0.0)

    # Lane-shaped partial sum: cheap sublane reduce + lane-wise accumulate,
    # riding in VPU/XLU slack under the HBM roofline.
    partial = jnp.sum(abs_diff, axis=0, keepdims=True)   # (1, 128)
    out_ref[...] += partial[None]                         # (1, 1, 128)


def height_loss(y, z, min_height=-300.0, max_height=300.0, eps=1e-6, *,
                num_splits=None, max_block_bytes=_TARGET_BLOCK_BYTES,
                small_input_threshold=_SMALL_INPUT_ELEMS):
    """Pallas equivalent of HeightLoss.forward: mean(|y - z|)."""
    height_range = max_height - min_height  # unused, matches reference  # noqa: F841

    assert y.shape == z.shape
    n_true = y.size
    if n_true == 0:
        # torch.mean over an empty tensor is NaN.
        return jnp.float32(jnp.nan)

    # Small-input fallback: pallas_call fixed overhead dominates and XLA's
    # fused reduction already hits the roofline for tiny maps.
    if n_true <= small_input_threshold:
        return jnp.mean(jnp.abs(y.astype(jnp.float32) - z.astype(jnp.float32)))

    yf = jnp.ravel(y)
    zf = jnp.ravel(z)

    rows = n_true // LANES
    main = rows * LANES
    tail = n_true - main

    if tail:
        # <=127 trailing elements handled by XLA; avoids padding (full HBM
        # copy) of both flattened inputs.
        tail_sum = jnp.sum(jnp.abs(yf[main:].astype(jnp.float32)
                                   - zf[main:].astype(jnp.float32)))
    else:
        tail_sum = jnp.float32(0.0)

    if rows == 0:
        return (tail_sum) * jnp.float32(1.0 / n_true)

    # TODO(synk): when tail != 0 the prefix slice below may materialize a copy;
    # a fully copy-free ragged path would need memory_space=pl.ANY + manual DMA.
    y2 = yf[:main].reshape(rows, LANES)
    z2 = zf[:main].reshape(rows, LANES)

    itemsize = max(y.dtype.itemsize, z.dtype.itemsize)
    sub = max(8, 32 // itemsize)  # sublane packing multiple for the dtype
    tile_rows = max(sub, (max_block_bytes // (LANES * itemsize)) // sub * sub)
    if tile_rows >= rows:
        tile_rows = rows  # full extent -> legal block shape for any dtype

    n_tiles = pl.cdiv(rows, tile_rows)
    if num_splits is None:
        num_splits = _num_tensorcores()
    num_splits = max(1, min(int(num_splits), n_tiles))
    tiles_per_split = pl.cdiv(n_tiles, num_splits)
    need_mask = (num_splits * tiles_per_split * tile_rows) != rows

    def in_index(c, j):
        # Clamp duplicated trailing tiles onto the last real tile; their
        # contribution is masked to zero in the kernel.
        return (jnp.minimum(c * tiles_per_split + j, n_tiles - 1), 0)

    kernel = functools.partial(
        _mae_partial_kernel,
        total_rows=rows,
        tile_rows=tile_rows,
        tiles_per_split=tiles_per_split,
        need_mask=need_mask,
    )

    # 2 inputs, double-buffered, + slack for outputs/misc.
    block_bytes = tile_rows * LANES * (y.dtype.itemsize + z.dtype.itemsize)
    vmem_limit = int(2 * block_bytes + (8 << 20))

    partials = pl.pallas_call(
        kernel,
        out_shape=jax.ShapeDtypeStruct((num_splits, 1, LANES), jnp.float32),
        grid_spec=pltpu.PrefetchScalarGridSpec(
            num_scalar_prefetch=0,
            grid=(num_splits, tiles_per_split),
            in_specs=[
                pl.BlockSpec((tile_rows, LANES), in_index),
                pl.BlockSpec((tile_rows, LANES), in_index),
            ],
            out_specs=pl.BlockSpec((1, 1, LANES), lambda c, j: (c, 0, 0)),
        ),
        compiler_params=pltpu.CompilerParams(
            dimension_semantics=("parallel", "arbitrary"),
            vmem_limit_bytes=vmem_limit,
        ),
    )(y2, z2)

    return (jnp.sum(partials) + tail_sum) * jnp.float32(1.0 / n_true)


if __name__ == "__main__":
    key = jax.random.PRNGKey(0)
    ky, kz = jax.random.split(key)

    def _check(shape, **kw):
        yy = jax.random.uniform(ky, shape, jnp.float32, minval=-300.0, maxval=300.0)
        zz = jax.random.uniform(kz, shape, jnp.float32, minval=-300.0, maxval=300.0)
        got = jax.block_until_ready(height_loss(yy, zz, **kw))
        ref = jnp.mean(jnp.abs(yy - zz))
        assert jnp.allclose(got, ref, rtol=1e-4, atol=1e-3), (shape, got, ref)

    # 1) Small module-consistent shape, forced through the Pallas kernel.
    _check((2, 4, 16, 16), small_input_threshold=0)
    # 2) Ragged element count (not a multiple of 128): XLA tail + kernel body.
    _check((3, 5, 7, 11), small_input_threshold=0)
    # 3) Multi-tile + 2-way core split + clamped duplicate tile + partial last tile.
    _check((2, 4, 64, 64), small_input_threshold=0, num_splits=2,
           max_block_bytes=96 * LANES * 4)
    # 4) Default configuration (auto split, ~4 MiB blocks) on a moderate map.
    _check((4, 4, 512, 512))
    # 5) Tiny default call exercises the XLA small-input fallback.
    _check((2, 4, 16, 16))

    print("KERNEL_OK")
</pallas_src>

<mosaic_0001>
module attributes {stable_mosaic.version = 11 : i64} {
  func.func @_mae_partial_kernel(%arg0: i32, %arg1: i32, %arg2: memref<16x128xf32, #tpu.memory_space<vmem>>, %arg3: memref<16x128xf32, #tpu.memory_space<vmem>>, %arg4: memref<1x1x128xf32, #tpu.memory_space<vmem>>) attributes {dimension_semantics = [#tpu.dimension_semantics<parallel>, #tpu.dimension_semantics<arbitrary>], iteration_bounds = array<i64: 1, 1>, scalar_prefetch = 0 : i64, scratch_operands = 0 : i64, tpu.core_type = #tpu.core_type<tc>, window_params = [{transform_indices = @transform_0, window_bounds = array<i64: 16, 128>}, {transform_indices = @transform_1, window_bounds = array<i64: 16, 128>}, {transform_indices = @transform_2, window_bounds = array<i64: 1, 1, 128>}]} {
    %c0_i32 = arith.constant 0 : i32
    %0 = arith.cmpi eq, %arg1, %c0_i32 : i32
    %1 = arith.extui %0 : i1 to i32
    %c0_i32_0 = arith.constant 0 : i32
    %2 = arith.cmpi ne, %1, %c0_i32_0 : i32
    scf.if %2 {
      %cst_10 = arith.constant 0.000000e+00 : f32
      %13 = vector.broadcast %cst_10 : f32 to vector<1x1x128xf32>
      %c0_11 = arith.constant 0 : index
      %c0_12 = arith.constant 0 : index
      %c0_13 = arith.constant 0 : index
      %14 = vector.load %arg4[%c0_11, %c0_12, %c0_13] : memref<1x1x128xf32, #tpu.memory_space<vmem>>, vector<1x1x128xf32>
      tpu.vector_store %arg4[%c0_11, %c0_12, %c0_13], %13 {strides = array<i32>} : memref<1x1x128xf32, #tpu.memory_space<vmem>>, vector<1x1x128xf32>,
    } else {
    }
    %c0 = arith.constant 0 : index
    %c0_1 = arith.constant 0 : index
    %3 = vector.load %arg2[%c0, %c0_1] : memref<16x128xf32, #tpu.memory_space<vmem>>, vector<16x128xf32>
    %c0_2 = arith.constant 0 : index
    %c0_3 = arith.constant 0 : index
    %4 = vector.load %arg3[%c0_2, %c0_3] : memref<16x128xf32, #tpu.memory_space<vmem>>, vector<16x128xf32>
    %5 = arith.subf %3, %4 : vector<16x128xf32>
    %6 = math.absf %5 : vector<16x128xf32>
    %cst = arith.constant dense<0.000000e+00> : vector<128xf32>
    %7 = vector.multi_reduction <add>, %6, %cst [0] : vector<16x128xf32> to vector<128xf32>
    %8 = vector.shape_cast %7 : vector<128xf32> to vector<1x128xf32>
    %c0_4 = arith.constant 0 : index
    %c0_5 = arith.constant 0 : index
    %c0_6 = arith.constant 0 : index
    %9 = vector.load %arg4[%c0_4, %c0_5, %c0_6] : memref<1x1x128xf32, #tpu.memory_space<vmem>>, vector<1x1x128xf32>
    %10 = vector.shape_cast %8 : vector<1x128xf32> to vector<1x1x128xf32>
    %11 = arith.addf %9, %10 : vector<1x1x128xf32>
    %c0_7 = arith.constant 0 : index
    %c0_8 = arith.constant 0 : index
    %c0_9 = arith.constant 0 : index
    %12 = vector.load %arg4[%c0_7, %c0_8, %c0_9] : memref<1x1x128xf32, #tpu.memory_space<vmem>>, vector<1x1x128xf32>
    tpu.vector_store %arg4[%c0_7, %c0_8, %c0_9], %11 {strides = array<i32>} : memref<1x1x128xf32, #tpu.memory_space<vmem>>, vector<1x1x128xf32>,
    return
  }
  func.func @transform_0(%arg0: i32, %arg1: i32) -> (i32, i32) {
    %c1_i32 = arith.constant 1 : i32
    %0 = arith.muli %arg0, %c1_i32 : i32
    %1 = arith.addi %0, %arg1 : i32
    %c0_i32 = arith.constant 0 : i32
    %2 = arith.minsi %1, %c0_i32 : i32
    %c0_i32_0 = arith.constant 0 : i32
    %c0_i32_1 = arith.constant 0 : i32
    return %2, %c0_i32_0 : i32, i32
  }
  func.func @transform_1(%arg0: i32, %arg1: i32) -> (i32, i32) {
    %c1_i32 = arith.constant 1 : i32
    %0 = arith.muli %arg0, %c1_i32 : i32
    %1 = arith.addi %0, %arg1 : i32
    %c0_i32 = arith.constant 0 : i32
    %2 = arith.minsi %1, %c0_i32 : i32
    %c0_i32_0 = arith.constant 0 : i32
    %c0_i32_1 = arith.constant 0 : i32
    return %2, %c0_i32_0 : i32, i32
  }
  func.func @transform_2(%arg0: i32, %arg1: i32) -> (i32, i32, i32) {
    %c0_i32 = arith.constant 0 : i32
    %c0_i32_0 = arith.constant 0 : i32
    %c0_i32_1 = arith.constant 0 : i32
    return %arg0, %c0_i32, %c0_i32_0 : i32, i32, i32
  }
}

</mosaic_0001>

<bundles_post_ra>
// kernel: tpu_custom_call.1
= control target key start
LH: loop header
LB: loop body
LE: loop exit
PB: predicated region body
PF: predicated region fallthrough
CT: control target
= control target key end

     0   :  { %7 = vsyncpa [#allocation3], 0  ;;  %s205_s0 = inlined_call_operand.hbm [shape: f32[16,128], index: 0, kind: input, shape index: {}]   ;;  %s206_s1 = inlined_call_operand.hbm [shape: f32[16,128], index: 1, kind: input, shape index: {}]   ;;  %s207_s2 = inlined_call_operand.hbm [shape: f32[1,1,128], index: 2, kind: output, shape index: {}]  }
   0x1   :  { %8 = vsyncpa [#allocation6], 0 }
   0x2   :  { %9 = vsyncpa [#allocation4], 0  ;;  %s175_s9 = smov [#allocation2]  }
   0x3   :  { %s21_s10 = sshll.u32 %s175_s9, 4  ;;  %s22_s10 = int_to_ptr.vmem [resolvable:$true] %s21_s10 }
   0x4   :  { %s117_s11 = scalar_lea.vmem %s22_s10, 256  ;;  %p122_p1 = scmp.lt.s32.totalorder %s22_s10, %s22_s10 }
   0x5   :  { %p118_p0 = scmp.ne.s32.totalorder %s22_s10, %s117_s11  ;;  %p123_p2 = scmp.lt.s32.totalorder %s117_s11, %s117_s11 }
   0x7   :  { %p124_p3 = por %p123_p2, %p122_p1 }
   0x9   :  { %p125_p4 = pnand %p124_p3, %p118_p0 }
   0xb   :  { %128 = shalt.err (!%p125_p4)
}
   0xc   :  { %s176_s12 = smov 128   ;;  %s177_s13 = smov 8  }
   0xd   :  { %27 = dma.hbm_to_vmem [thread:$0]  %s205_s0, 256, %s22_s10, [#allocation3], %s176_s12, %s176_s12, %s177_s13  }
   0xe   :  { %s178_s16 = smov [#allocation5]  }
   0xf   :  { %s39_s17 = sshll.u32 %s178_s16, 4  ;;  %s40_s17 = int_to_ptr.vmem [resolvable:$true] %s39_s17 }
  0x10   :  { %s137_s18 = scalar_lea.vmem %s40_s17, 256  ;;  %p142_p6 = scmp.lt.s32.totalorder %s40_s17, %s40_s17 }
  0x11   :  { %p138_p5 = scmp.ne.s32.totalorder %s40_s17, %s137_s18  ;;  %p143_p7 = scmp.lt.s32.totalorder %s137_s18, %s137_s18 }
  0x13   :  { %p144_p8 = por %p143_p7, %p142_p6 }
  0x15   :  { %p145_p9 = pnand %p144_p8, %p138_p5 }
  0x17   :  { %148 = shalt.err (!%p145_p9)
}
  0x18   :  { %45 = dma.hbm_to_vmem [thread:$0]  %s206_s1, 256, %s40_s17, [#allocation6], %s176_s12, %s176_s12, %s177_s13  }
  0x19   :  { %169 = dma.done.wait [#allocation3], 256  }
  0x1a   :  { %170 = vsyncadd [#allocation3], 4294967040 }
  0x1b   :  { %171 = dma.done.wait [#allocation6], 256  }
  0x1c   :  { %172 = vsyncadd [#allocation6], 4294967040  ;;  %v179_v0 = vmov 0.0   ;;  %v65_v1 = vld [vmem:[#allocation2] sm:$0xff]  ;;  %v66_v2 = vld [vmem:[#allocation2 + $0x8] sm:$0xff]  ;;  %s180_s0 = smov [#allocation7]  }
  0x1d   :  { %64 = vst [vmem:[#allocation7] sm:$0x1] %v179_v0  ;;  %v67_v3 = vld [vmem:[#allocation5] sm:$0xff]  ;;  %v68_v4 = vld [vmem:[#allocation5 + $0x8] sm:$0xff]  ;;  %s89_s1 = sshll.u32 %s180_s0, 4  ;;  %s90_s1 = int_to_ptr.vmem [resolvable:$true] %s89_s1 }
  0x1e   :  { %v69_v5 = vsub.f32 %v65_v1, %v67_v3  ;;  %v70_v6 = vsub.f32 %v66_v2, %v68_v4  ;;  %s149_s21 = scalar_lea.vmem %s90_s1, 16  ;;  %s153_s22 = scalar_lea.vmem %s90_s1, 32 }
  0x1f   :  { %p150_p10 = scmp.ne.s32.totalorder %s90_s1, %s149_s21  ;;  %p154_p11 = scmp.lt.s32.totalorder %s90_s1, %s90_s1 }
  0x20   :  { %v71_v7 = vand.u32 2147483647, %v69_v5  ;;  %v72_v8 = vand.u32 2147483647, %v70_v6  ;;  %p155_p12 = scmp.lt.s32.totalorder %s153_s22, %s149_s21 }
  0x22   :  { %v73_v9 = vadd.f32 %v72_v8, %v71_v7  ;;  %p156_p13 = por %p155_p12, %p154_p11 }
  0x24   :  { %v74_v10 = vrot.slane %v73_v9, 4  ;;  %v80_v15 = vld [vmem:[#allocation7] sm:$0x1]  ;;  %p157_p0 = pnand %p156_p13, %p150_p10 }
  0x26   :  { %v75_v11 = vadd.f32 %v74_v10, %v73_v9 }
  0x28   :  { %v76_v12 = vrot.slane %v75_v11, 2 }
  0x2a   :  { %v77_v13 = vadd.f32 %v76_v12, %v75_v11 }
  0x2c   :  { %v78_v14 = vrot.slane %v77_v13, 1 }
  0x2e   :  { %v79_v16 = vadd.f32 %v78_v14, %v77_v13 }
  0x30   :  { %v81_v17 = vadd.f32 %v80_v15, %v79_v16 }
  0x32   :  { %82 = vst [vmem:[#allocation7] sm:$0x1] %v81_v17 }
  0x33   :  { %160 = shalt.err (!%p157_p0)
}
  0x34   :  { %92 = dma.vmem_to_hbm [thread:$0]  %s90_s1, 16, %s207_s2, [#allocation4]  }
  0x35   :  { %173 = dma.done.wait [#allocation4], 16  }
  0x36   :  { %174 = vsyncadd [#allocation4], 4294967280 }
  0x37   :  { %96 = vsyncpa [#allocation3], 1 }
  0x38   :  { %97 = vsyncpa [#allocation6], 1 }
  0x39   :  { %98 = vsyncpa [#allocation4], 1 }

</bundles_post_ra>
